<compile_context>
chip_gen: v7x
topology: tpu7x:2x2x1
jax: 0.10.0
libtpu: 0.0.40
codegen_flags: <defaults>
</compile_context>

<pallas_src>
import functools

import jax
import jax.numpy as jnp
from jax.experimental import pallas as pl
from jax.experimental.pallas import tpu as pltpu


def _round_up(x, m):
    return ((x + m - 1) // m) * m


def _mlp_kernel(x_ref, w1_ref, b1_ref, w2_ref, b2_ref, o_ref):
    # Layer 1: Linear (bf16 MXU operands, f32 accumulation) + bias + ReLU.
    # Dropout == identity in eval mode.
    h = jnp.dot(x_ref[...], w1_ref[...], preferred_element_type=jnp.float32)
    h = jnp.maximum(h + b1_ref[...], 0.0)
    # Layer 2: feed the activation straight into the second matmul (no
    # explicit VMEM staging -- avoids an extra store+load per row tile).
    out = jnp.dot(h.astype(w2_ref.dtype), w2_ref[...],
                  preferred_element_type=jnp.float32)
    out = jnp.maximum(out + b2_ref[...], 0.0)
    o_ref[...] = out.astype(o_ref.dtype)


def prepare_params(w1, b1, w2, b2, compute_dtype=jnp.bfloat16):
    """One-time parameter prep (outside the jitted forward): cast weights to
    the MXU compute dtype, keep biases f32 as (1, out) broadcast rows."""
    return (w1.astype(compute_dtype),
            b1.astype(jnp.float32).reshape(1, -1),
            w2.astype(compute_dtype),
            b2.astype(jnp.float32).reshape(1, -1))


@functools.partial(jax.jit, static_argnames=("row_tile",))
def mlp_encoder_forward(x, w1, b1, w2, b2, *, row_tile=512):
    """x: (B, T, F) -> (B, T, H2). Weights wi: (in, out) bf16, biases bi f32."""
    B, T, F = x.shape
    H1 = w1.shape[1]
    H2 = w2.shape[1]
    M = B * T

    # Normalize param dtypes/shapes (no-ops when prepare_params was used).
    w1 = w1.astype(jnp.bfloat16)
    w2 = w2.astype(jnp.bfloat16)
    b1 = b1.astype(jnp.float32).reshape(1, H1)
    b2 = b2.astype(jnp.float32).reshape(1, H2)

    # Row tile: large (default 512, a 256-multiple) but capped so the grid has
    # at least 2 steps when M allows it (v7x has 2 TensorCores per chip).
    max_tile = max(8, _round_up(-(-M // 2), 8)) if M > 8 else 8
    row_tile = max(8, min(int(row_tile), max_tile))
    M_p = _round_up(M, row_tile)

    # bf16 activations; only the row dim is ever padded (no lane padding).
    x_flat = x.reshape(M, F).astype(jnp.bfloat16)
    if M_p != M:
        x_flat = jnp.pad(x_flat, ((0, M_p - M), (0, 0)))

    grid = (M_p // row_tile,)

    # VMEM budget: double-buffered x/out tiles + single-copy resident weights.
    need_bytes = (
        2 * row_tile * F * 2          # x tile (bf16), double-buffered
        + 2 * row_tile * H2 * 4       # out tile (f32), double-buffered
        + F * H1 * 2 + H1 * 4         # W1 (bf16), b1 (f32)
        + H1 * H2 * 2 + H2 * 4        # W2 (bf16), b2 (f32)
    )
    try:
        vmem_cap = int(pltpu.get_tpu_info().vmem_capacity_bytes)
    except Exception:
        vmem_cap = 64 * 2**20          # conservative (v7x per-TC) fallback
    vmem_limit = int(min(vmem_cap - 16 * 2**20, max(32 * 2**20, 2 * need_bytes)))
    vmem_limit = max(vmem_limit, 8 * 2**20)

    out_flat = pl.pallas_call(
        _mlp_kernel,
        out_shape=jax.ShapeDtypeStruct((M_p, H2), jnp.float32),
        grid_spec=pltpu.PrefetchScalarGridSpec(
            num_scalar_prefetch=0,
            grid=grid,
            in_specs=[
                # x row tile; last block dim == full array dim F (no lane pad).
                pl.BlockSpec((row_tile, F), lambda i: (i, 0)),
                pl.BlockSpec(memory_space=pltpu.MemorySpace.VMEM),   # W1 (whole, 1 copy)
                pl.BlockSpec(memory_space=pltpu.MemorySpace.VMEM),   # b1
                pl.BlockSpec(memory_space=pltpu.MemorySpace.VMEM),   # W2
                pl.BlockSpec(memory_space=pltpu.MemorySpace.VMEM),   # b2
            ],
            # Output at its true width H2 (last block dim == full array dim);
            # masked vst for small H2 beats writing 4x padded bytes + a slice.
            out_specs=pl.BlockSpec((row_tile, H2), lambda i: (i, 0)),
        ),
        compiler_params=pltpu.CompilerParams(
            dimension_semantics=("parallel",),
            vmem_limit_bytes=vmem_limit,
        ),
    )(x_flat, w1, b1, w2, b2)

    if M_p != M:
        out_flat = out_flat[:M]
    return out_flat.reshape(B, T, H2)


def _reference_forward_f32(x, w1, b1, w2, b2):
    B, T, F = x.shape
    h = x.reshape(B * T, F)
    h = jnp.maximum(h @ w1 + b1, 0.0)
    h = jnp.maximum(h @ w2 + b2, 0.0)
    return h.reshape(B, T, -1)


def _reference_forward_bf16(x, w1, b1, w2, b2):
    B, T, F = x.shape
    h = x.reshape(B * T, F).astype(jnp.bfloat16)
    h = jnp.dot(h, w1.astype(jnp.bfloat16), preferred_element_type=jnp.float32)
    h = jnp.maximum(h + b1.astype(jnp.float32), 0.0)
    h = jnp.dot(h.astype(jnp.bfloat16), w2.astype(jnp.bfloat16),
                preferred_element_type=jnp.float32)
    h = jnp.maximum(h + b2.astype(jnp.float32), 0.0)
    return h.reshape(B, T, -1)


def _make_params(key, F, H1, H2):
    kw1, kb1, kw2, kb2 = jax.random.split(key, 4)
    # Mimics nn.Linear's uniform(-1/sqrt(in), 1/sqrt(in)); stored transposed as (in, out).
    lim1 = 1.0 / jnp.sqrt(jnp.float32(F))
    w1 = jax.random.uniform(kw1, (F, H1), jnp.float32, -lim1, lim1)
    b1 = jax.random.uniform(kb1, (H1,), jnp.float32, -lim1, lim1)
    lim2 = 1.0 / jnp.sqrt(jnp.float32(H1))
    w2 = jax.random.uniform(kw2, (H1, H2), jnp.float32, -lim2, lim2)
    b2 = jax.random.uniform(kb2, (H2,), jnp.float32, -lim2, lim2)
    return w1, b1, w2, b2


if __name__ == "__main__":
    key = jax.random.PRNGKey(0)
    kp, kx_small, kx_big = jax.random.split(key, 3)

    # Small shapes consistent with the module: B=2, T=8, input_dim=16, layer_dims=[32, 32].
    B, T, F = 2, 8, 16
    H1, H2 = 32, 32
    w1, b1, w2, b2 = _make_params(kp, F, H1, H2)
    pw1, pb1, pw2, pb2 = prepare_params(w1, b1, w2, b2)   # one-time bf16 cast / reshape

    x = jax.random.normal(kx_small, (B, T, F), dtype=jnp.float32)
    out = jax.block_until_ready(mlp_encoder_forward(x, pw1, pb1, pw2, pb2))
    assert out.shape == (B, T, H2), out.shape
    assert out.dtype == jnp.float32, out.dtype
    # Tight check against a bf16-compute reference (same arithmetic path).
    ref_bf = _reference_forward_bf16(x, w1, b1, w2, b2)
    assert jnp.allclose(out, ref_bf, atol=5e-3, rtol=5e-3), "mismatch vs bf16 reference (small)"
    # Loose check against the full-f32 module semantics (bf16 rounding error only).
    ref_f32 = _reference_forward_f32(x, w1, b1, w2, b2)
    assert jnp.allclose(out, ref_f32, atol=5e-2, rtol=5e-2), "mismatch vs f32 reference (small)"

    # Larger run: multi-step row grid (M=2000 -> row_tile=512, grid=4) plus the
    # padded-row slicing path.
    B2, T2 = 4, 500
    x_big = jax.random.normal(kx_big, (B2, T2, F), dtype=jnp.float32)
    out_big = jax.block_until_ready(mlp_encoder_forward(x_big, pw1, pb1, pw2, pb2))
    assert out_big.shape == (B2, T2, H2), out_big.shape
    ref_bf_big = _reference_forward_bf16(x_big, w1, b1, w2, b2)
    assert jnp.allclose(out_big, ref_bf_big, atol=5e-3, rtol=5e-3), "mismatch vs bf16 reference (big)"
    ref_f32_big = _reference_forward_f32(x_big, w1, b1, w2, b2)
    assert jnp.allclose(out_big, ref_f32_big, atol=5e-2, rtol=5e-2), "mismatch vs f32 reference (big)"

    print("KERNEL_OK")
</pallas_src>

<mosaic_0001>
module attributes {stable_mosaic.version = 11 : i64} {
  func.func @_mlp_kernel(%arg0: i32, %arg1: memref<8x16xbf16, #tpu.memory_space<vmem>>, %arg2: memref<16x32xbf16, #tpu.memory_space<vmem>>, %arg3: memref<1x32xf32, #tpu.memory_space<vmem>>, %arg4: memref<32x32xbf16, #tpu.memory_space<vmem>>, %arg5: memref<1x32xf32, #tpu.memory_space<vmem>>, %arg6: memref<8x32xf32, #tpu.memory_space<vmem>>) attributes {dimension_semantics = [#tpu.dimension_semantics<parallel>], iteration_bounds = array<i64: 2>, scalar_prefetch = 0 : i64, scratch_operands = 0 : i64, tpu.core_type = #tpu.core_type<tc>, window_params = [{transform_indices = @transform_0, window_bounds = array<i64: 8, 16>}, {pipeline_mode = #tpu.pipeline_mode<synchronous>, transform_indices = @transform_1, window_bounds = array<i64: 16, 32>}, {pipeline_mode = #tpu.pipeline_mode<synchronous>, transform_indices = @transform_2, window_bounds = array<i64: 1, 32>}, {pipeline_mode = #tpu.pipeline_mode<synchronous>, transform_indices = @transform_3, window_bounds = array<i64: 32, 32>}, {pipeline_mode = #tpu.pipeline_mode<synchronous>, transform_indices = @transform_4, window_bounds = array<i64: 1, 32>}, {transform_indices = @transform_5, window_bounds = array<i64: 8, 32>}]} {
    %c0 = arith.constant 0 : index
    %c0_0 = arith.constant 0 : index
    %0 = vector.load %arg1[%c0, %c0_0] : memref<8x16xbf16, #tpu.memory_space<vmem>>, vector<8x16xbf16>
    %c0_1 = arith.constant 0 : index
    %c0_2 = arith.constant 0 : index
    %1 = vector.load %arg2[%c0_1, %c0_2] : memref<16x32xbf16, #tpu.memory_space<vmem>>, vector<16x32xbf16>
    %cst = arith.constant dense<0.000000e+00> : vector<8x32xf32>
    %2 = tpu.matmul %0, %1, %cst {dimension_numbers = #tpu.dot_dimension_numbers<[1], [0], [0], [1], [0, 0, 1, 1], [], []>} : vector<8x16xbf16>, vector<16x32xbf16>, vector<8x32xf32> -> vector<8x32xf32>
    %c0_3 = arith.constant 0 : index
    %c0_4 = arith.constant 0 : index
    %3 = vector.load %arg3[%c0_3, %c0_4] : memref<1x32xf32, #tpu.memory_space<vmem>>, vector<1x32xf32>
    %4 = vector.broadcast %3 : vector<1x32xf32> to vector<8x32xf32>
    %5 = arith.addf %2, %4 : vector<8x32xf32>
    %cst_5 = arith.constant 0.000000e+00 : f32
    %6 = vector.broadcast %cst_5 : f32 to vector<8x32xf32>
    %7 = arith.maximumf %5, %6 : vector<8x32xf32>
    %8 = arith.truncf %7 : vector<8x32xf32> to vector<8x32xbf16>
    %c0_6 = arith.constant 0 : index
    %c0_7 = arith.constant 0 : index
    %9 = vector.load %arg4[%c0_6, %c0_7] : memref<32x32xbf16, #tpu.memory_space<vmem>>, vector<32x32xbf16>
    %cst_8 = arith.constant dense<0.000000e+00> : vector<8x32xf32>
    %10 = tpu.matmul %8, %9, %cst_8 {dimension_numbers = #tpu.dot_dimension_numbers<[1], [0], [0], [1], [0, 0, 1, 1], [], []>} : vector<8x32xbf16>, vector<32x32xbf16>, vector<8x32xf32> -> vector<8x32xf32>
    %c0_9 = arith.constant 0 : index
    %c0_10 = arith.constant 0 : index
    %11 = vector.load %arg5[%c0_9, %c0_10] : memref<1x32xf32, #tpu.memory_space<vmem>>, vector<1x32xf32>
    %12 = vector.broadcast %11 : vector<1x32xf32> to vector<8x32xf32>
    %13 = arith.addf %10, %12 : vector<8x32xf32>
    %cst_11 = arith.constant 0.000000e+00 : f32
    %14 = vector.broadcast %cst_11 : f32 to vector<8x32xf32>
    %15 = arith.maximumf %13, %14 : vector<8x32xf32>
    %c0_12 = arith.constant 0 : index
    %c0_13 = arith.constant 0 : index
    %16 = vector.load %arg6[%c0_12, %c0_13] : memref<8x32xf32, #tpu.memory_space<vmem>>, vector<8x32xf32>
    tpu.vector_store %arg6[%c0_12, %c0_13], %15 {strides = array<i32>} : memref<8x32xf32, #tpu.memory_space<vmem>>, vector<8x32xf32>,
    return
  }
  func.func @transform_0(%arg0: i32) -> (i32, i32) {
    %c0_i32 = arith.constant 0 : i32
    %c0_i32_0 = arith.constant 0 : i32
    return %arg0, %c0_i32 : i32, i32
  }
  func.func @transform_1(%arg0: i32) -> (i32, i32) {
    %c0_i32 = arith.constant 0 : i32
    %c0_i32_0 = arith.constant 0 : i32
    %c0_i32_1 = arith.constant 0 : i32
    return %c0_i32, %c0_i32_0 : i32, i32
  }
  func.func @transform_2(%arg0: i32) -> (i32, i32) {
    %c0_i32 = arith.constant 0 : i32
    %c0_i32_0 = arith.constant 0 : i32
    %c0_i32_1 = arith.constant 0 : i32
    return %c0_i32, %c0_i32_0 : i32, i32
  }
  func.func @transform_3(%arg0: i32) -> (i32, i32) {
    %c0_i32 = arith.constant 0 : i32
    %c0_i32_0 = arith.constant 0 : i32
    %c0_i32_1 = arith.constant 0 : i32
    return %c0_i32, %c0_i32_0 : i32, i32
  }
  func.func @transform_4(%arg0: i32) -> (i32, i32) {
    %c0_i32 = arith.constant 0 : i32
    %c0_i32_0 = arith.constant 0 : i32
    %c0_i32_1 = arith.constant 0 : i32
    return %c0_i32, %c0_i32_0 : i32, i32
  }
  func.func @transform_5(%arg0: i32) -> (i32, i32) {
    %c0_i32 = arith.constant 0 : i32
    %c0_i32_0 = arith.constant 0 : i32
    return %arg0, %c0_i32 : i32, i32
  }
}

</mosaic_0001>

<bundles_post_ra>
// kernel: mlp_encoder_forward.1
= control target key start
LH: loop header
LB: loop body
LE: loop exit
PB: predicated region body
PF: predicated region fallthrough
CT: control target
= control target key end

     0   :  { %10 = vsyncpa [#allocation3], 0  ;;  %s719_s0 = inlined_call_operand.vmem [shape: bf16[16,16], index: 0, kind: input, shape index: {}]   ;;  %s720_s1 = inlined_call_operand.vmem [shape: bf16[16,32], index: 1, kind: input, shape index: {}]   ;;  %s721_s2 = inlined_call_operand.vmem [shape: f32[1,32], index: 2, kind: input, shape index: {}]   ;;  %s722_s3 = inlined_call_operand.vmem [shape: bf16[32,32], index: 3, kind: input, shape index: {}]   ;;  %s723_s4 = inlined_call_operand.vmem [shape: f32[1,32], index: 4, kind: input, shape index: {}]   ;;  %s724_s5 = inlined_call_operand.hbm [shape: f32[16,32], index: 5, kind: output, shape index: {}]  }
   0x1   :  { %12 = vsyncpa [#allocation3 + $0x1], 0  ;;  %s602_s18 = smov 0   ;;  %s604_s19 = smov 0  }
   0x2   :  { %s606_s20 = smov 0   ;;  %s608_s21 = smov 0  }
   0x3 LB: > { %s623_s22 = sadd.s32 4294967295, %s567_s21   ;;  %s425_s23 = sadd.s32 4294967294, %s567_s21   ;;  %s567_s21 = sphi %s608_s21, %s730_s21   ;;  %s563_s20 = sphi %s606_s20, %s729_s20   ;;  %s559_s19 = sphi %s604_s19, %s728_s19   ;;  %s555_s18 = sphi %s602_s18, %s727_s18  }
   0x4   : > { %s627_s24 = sadd.s32 1, %s567_s21   ;;  %s135_s25 = sadd.s32 1, %s563_s20 }
   0x5   : > { %s132_s26 = ssub.s32 %s567_s21, %s627_s24  ;;  %p145_p0 = scmp.ne.s32.totalorder %s563_s20, %s559_s19 }
   0x6   : > { %p133_p1 = scmp.eq.s32.totalorder %s132_s26, 0  ;;  %p146_p2 = scmp.eq.s32.totalorder %s623_s22, 1 }
   0x7   : > { %p151_p3 = scmp.ne.s32.totalorder %s559_s19, %s555_s18  ;;  %p152_p4 = scmp.eq.s32.totalorder %s425_s23, 1 }
   0x8   : > { %s638_s27 = scalar_select %p133_p1, %s563_s20, %s135_s25  }
   0x9   : > { %p640_p5 = por %p146_p2, %p145_p0  ;;  %p644_p6 = por %p152_p4, %p151_p3 }
   0xa   : > { %p428_p7 = scmp.ge.s32.totalorder %s567_s21, 1  ;;  %p189_p8 = scmp.lt.s32.totalorder %s567_s21, 3 }
   0xc   : > { %p190_p9 = pnand %p428_p7, %p189_p8 }
   0xd   : > { %v502_v0 = vld [vmem:[%s720_s1] sm:$0xff] (!%p190_p9)   ;;  %v569_v1 = vmov (!%p190_p9), 0.0   ;;  %p216_p10 = scmp.lt.s32.totalorder (!%p190_p9), %s623_s22, 1  ;;  %vm570_vm0 = vmmov (!%p190_p9), 0   ;;  %vm237_vm1 = vcmask (!%p190_p9), 130048   ;;  %v504_v4 = vld [vmem:[%s722_s3 + $0x8] sm:$0xff] (!%p190_p9)  }
   0xe   : > { %193 = sbr.rel (%p190_p9) target bundleno = 474 (0x1da), region = 40  ;;  %447 = vmatprep.subr.bf16.mxu0 (!%p190_p9), %v569_v1  ;;  %453 = vmatprep.subr.bf16.mxu1 (!%p190_p9), %v569_v1  ;;  %v503_v3 = vld [vmem:[%s722_s3] sm:$0xff] (!%p190_p9)   ;;  %vm306_vm2 = vcmask (!%p190_p9), 261120   ;;  %s213_s23 = sand.u32 (!%p190_p9), 1, %s559_s19  }
   0xf   : > { %448 = vmatpush3.bf16.msra.mxu0 (!%p190_p9), %v502_v0  ;;  %449 = vmatprep.mubr.msk.bf16.mxu0 (!%p190_p9), %vm570_vm0, %v569_v1  ;;  %v431_v5 = vld [vmem:[%s721_s2] ss:$0 sm:$0xff] (!%p190_p9)  ;;  %s429_s25 = sshll.u32 (!%p190_p9), %s213_s23, 3  ;;  %s439_s6 = sshll.u32 (!%p190_p9), %s623_s22, 7 }
  0x10   : > { %457 = vmatprep.mubr.msk.bf16.mxu1 (!%p190_p9), %vm570_vm0, %v569_v1  ;;  %454 = vmatpush3.bf16.msra.mxu1 (!%p190_p9), %v503_v3  ;;  %v434_v13 = vld [vmem:[%s723_s4] ss:$0 sm:$0xff] (!%p190_p9)  ;;  %s571_s13 = smov (!%p190_p9), [#allocation2]  }
  0x11   : > { %455 = vmatprep.subr.bf16.mxu1 (!%p190_p9), %v569_v1  ;;  %s509_s14 = sshll.u32 (!%p190_p9), %s571_s13, 4  ;;  %s510_s14 = int_to_ptr.vmem [resolvable:$false] %s509_s14 }
  0x12   : > { %s511_s15 = scalar_lea.vmem (!%p190_p9), %s510_s14, 256 }
  0x14   : > { %456 = vmatpush3.bf16.msra.mxu1 (!%p190_p9), %v504_v4 }
  0x15   : > { %s217_s7 = scalar_select %p216_p10, %s623_s22, 1 }
  0x16   : > { %s353_s22 = scalar_lea.sflag [#allocation3], %s213_s23 }
  0x17   : > { %s430_s8 = sshll.u32 %s217_s7, 2  ;;  %s215_s7 = scalar_lea.vmem [#allocation2], %s429_s25 }
  0x18   : > { %s219_s11 = scalar_lea.vmem %s719_s0, %s430_s8  ;;  %s366_s8 = sshll.u32 %s215_s7, 4  ;;  %s678_s8 = int_to_ptr.vmem [resolvable:$true] %s366_s8 }
  0x19   : > { %v221_v2 = vld [vmem:[%s219_s11] sm:$0xf]  ;;  %s676_s11 = scalar_lea.hbm %s724_s5, %s439_s6  ;;  %s505_s12 = scalar_lea.vmem %s678_s8, 128 }
  0x1a   : > { %450 = vmatmul.mubr.msk.bf16.vlgmr.msra.gmra.mrb[0].mxu0 %vm237_vm1, %v221_v2  ;;  %p506_p11 = scmp.ne.s32.totalorder %s678_s8, %s505_s12  ;;  %p512_p0 = scmp.lt.s32.totalorder %s678_s8, %s510_s14 }
  0x1b   : > { %p513_p1 = scmp.lt.s32.totalorder %s511_s15, %s505_s12 }
  0x1c   : > { %p507_p12 = pnand %p506_p11, %p640_p5 }
  0x1d   : > { %p514_p2 = por %p513_p1, %p512_p0 }
  0x1e   : > { %p508_p13 = pneg %p507_p12 }
  0x20   : > { %p515_p3 = pnand %p514_p2, %p508_p13 }
  0xed   : > { %v275_v6 = vpop.f32.mrb[0].mxu0 }
  0xee   : > { %v276_v7 = vadd.f32 %v431_v5, %v275_v6  ;;  %v451_v8 = vpop.f32.mrb[1].mxu0 }
  0xef   : > { %v278_v9 = vpop.f32.mrb[2].mxu0 }
  0xf0   : > { %v281_v10 = vmax.f32 %v276_v7, 0.0  ;;  %v452_v11 = vpop.f32.mrb[3].mxu0 }
  0xf2   : > { %v282_v12 = vpack.c.bf16 %v281_v10, %v281_v10 }
  0xf4   : > { %458 = vmatmul.mubr.msk.bf16.vlgmr.msra.gmra.mrb[0].mxu1 %vm306_vm2, %v282_v12 }
 0x1c7   : > { %v344_v14 = vpop.f32.mrb[0].mxu1 }
 0x1c8   : > { %v345_v15 = vadd.f32 %v434_v13, %v344_v14  ;;  %v459_v16 = vpop.f32.mrb[1].mxu1 }
 0x1c9   : > { %v347_v17 = vpop.f32.mrb[2].mxu1 }
 0x1ca   : > { %v350_v18 = vmax.f32 %v345_v15, 0.0  ;;  %v460_v19 = vpop.f32.mrb[3].mxu1 }
 0x1cc   : > { %351 = vst.msk [vmem:[%s215_s7] sm:$0xff] %vm306_vm2, %v350_v18 }
 0x1cd   : > { %518 = shalt.err (!%p515_p3)
}
 0x1ce   : > { %s519_s16 = scalar_lea.hbm %s676_s11, 128  ;;  %s523_s25 = scalar_lea.hbm %s724_s5, 256 }
 0x1cf   : > { %p520_p4 = scmp.ne.s32.totalorder %s676_s11, %s519_s16  ;;  %p524_p9 = scmp.lt.u32.totalorder %s676_s11, %s724_s5 }
 0x1d0   : > { %p525_p10 = scmp.lt.u32.totalorder %s523_s25, %s519_s16  ;;  %p527_p12 = scmp.lt.u32.totalorder %s519_s16, %s676_s11 }
 0x1d1   : > { %p521_p7 = pnand %p520_p4, %p640_p5 }
 0x1d2   : > { %p526_p11 = por %p525_p10, %p524_p9 }
 0x1d3   : > { %p522_p8 = pneg %p521_p7 }
 0x1d4   : > { %p528_p13 = por %p527_p12, %p526_p11 }
 0x1d6   : > { %p529_p0 = pnand %p528_p13, %p522_p8 }
 0x1d8   : > { %532 = shalt.err (!%p529_p0)
}
 0x1d9   : > { %461 = dma.vmem_to_hbm [thread:$0]  (%p640_p5), %s678_s8, 128, %s676_s11, %s353_s22  }
 0x1da PF: > { %p467_p1 = scmp.ge.s32.totalorder %s567_s21, 2  ;;  %s378_s6 = sand.u32 1, %s555_s18  }
 0x1db   : > { %s379_s7 = scalar_lea.sflag [#allocation3], %s378_s6 }
 0x1dc   : > { %p464_p2 = pnand %p467_p1, %p644_p6 }
 0x1de   : > { %550 = dma.done.wait (!%p464_p2), %s379_s7, 128  }
 0x1df   : > { %552 = vsyncadd (!%p464_p2), %s379_s7, 4294967168  ;;  %p15_p3 = scmp.ge.s32.totalorder %s627_s24, 4   ;;  %s727_s18 = smov %s559_s19 }
 0x1e0   : > { %s728_s19 = smov %s563_s20  ;;  %s729_s20 = smov %s638_s27 }
 0x1e1   : > { %s730_s21 = smov %s627_s24  ;;  %17 = sbr.rel (!%p15_p3) target bundleno = 3 (0x3), region = 75 }
 0x1e8   :  { %384 = vsyncpa [#allocation3], 1 }
 0x1e9   :  { %386 = vsyncpa [#allocation3 + $0x1], 1 }

</bundles_post_ra>
